<compile_context>
chip_gen: v7x
topology: tpu7x:2x2x1
jax: 0.10.0
libtpu: 0.0.40
codegen_flags: <defaults>
</compile_context>

<pallas_src>
import jax
import jax.numpy as jnp
from jax.experimental import pallas as pl
from jax.experimental.pallas import tpu as pltpu


def decoder_kernel(x_ref, wl_ref, bl_ref, whh_ref, bg_ref, who_ref, bho_ref,
                   out_ref):
    B = x_ref.shape[0]
    H = wl_ref.shape[1]
    G = 4 * H
    seq_len = out_ref.shape[0] // B

    # latent -> hidden : this is the LSTM initial hidden state h_0
    # NOTE: default dot precision matches the pure-JAX reference below; pass
    # precision=jax.lax.Precision.HIGHEST on the three dots if bit-closeness
    # to a PyTorch f32 LSTM over the 8 recurrent steps is required.
    h = jnp.dot(x_ref[...], wl_ref[...],
                preferred_element_type=jnp.float32) + bl_ref[...]
    c = jnp.zeros_like(h)                       # _c_0 is zeros

    # Recurrent weights stay resident across the unrolled loop; gate bias is
    # broadcast ONCE (hoisted out of the loop).
    whh = whh_ref[...]                          # (H, 4H), gate order i|f|g|o
    bg = jnp.broadcast_to(bg_ref[...], (B, G))  # (B, 4H) == b_ih + b_hh

    # LSTM input at every timestep is zeros -> W_ih @ x_t == 0 exactly, so the
    # gate pre-activations are a single fused h @ W_hh + (b_ih + b_hh).
    hs = []
    for t in range(seq_len):                    # fully unrolled recurrence
        gates = jnp.dot(h, whh, preferred_element_type=jnp.float32) + bg
        # Two full-width EUP transcendentals over all 4H lanes instead of four
        # narrow 32-lane ones; gate windows are lane selects of those results.
        sig = jax.nn.sigmoid(gates)
        tah = jnp.tanh(gates)
        i_g = sig[:, 0 * H:1 * H]
        f_g = sig[:, 1 * H:2 * H]
        g_g = tah[:, 2 * H:3 * H]
        o_g = sig[:, 3 * H:4 * H]
        c = f_g * c + i_g * g_g
        h = o_g * jnp.tanh(c)
        hs.append(h)                            # stays in registers (~4 KiB total)

    # Register-stacked hidden states (no VMEM scratch store->load round trip):
    # one batched projection matmul + one contiguous 2-D store.
    hs_all = jnp.concatenate(hs, axis=0)        # (seq*B, H)
    out_ref[...] = (jnp.dot(hs_all, who_ref[...],
                            preferred_element_type=jnp.float32)
                    + bho_ref[...]).astype(out_ref.dtype)


def decoder_forward(x, params, seq_length):
    batch, latent_dim = x.shape
    hidden_dim = params["w_l2h"].shape[1]
    out_dim = params["w_ho"].shape[1]

    flops = (2 * batch * latent_dim * hidden_dim                       # h_0
             + seq_length * 2 * batch * hidden_dim * 4 * hidden_dim    # gates
             + 2 * seq_length * batch * hidden_dim * out_dim)          # proj
    # per step: sigmoid(4H) + tanh(4H) full width + tanh(H) on c, per row
    transcendentals = seq_length * batch * (2 * 4 * hidden_dim + hidden_dim)
    param_bytes = sum(int(v.size) * v.dtype.itemsize for v in params.values())
    bytes_accessed = (x.size * x.dtype.itemsize + param_bytes
                      + seq_length * batch * out_dim * 4)

    out2d = pl.pallas_call(
        decoder_kernel,
        out_shape=jax.ShapeDtypeStruct((seq_length * batch, out_dim), jnp.float32),
        in_specs=[pl.BlockSpec(memory_space=pltpu.MemorySpace.VMEM)] * 7,
        out_specs=pl.BlockSpec(memory_space=pltpu.MemorySpace.VMEM),
        cost_estimate=pl.CostEstimate(flops=flops,
                                      transcendentals=transcendentals,
                                      bytes_accessed=bytes_accessed),
    )(
        x,
        params["w_l2h"], params["b_l2h"],
        params["w_hh"], params["b_gates"],
        params["w_ho"], params["b_ho"],
    )
    # back to PyTorch's seq-major (seq, batch, output_dim) layout
    return out2d.reshape(seq_length, batch, out_dim)


def init_params(key, seq_length, latent_dim, hidden_dim, output_dim):
    ks = jax.random.split(key, 8)
    # xavier_uniform for the two Linear weights (as in the module's __init__)
    bl2h = (6.0 / (latent_dim + hidden_dim)) ** 0.5
    bho = (6.0 / (hidden_dim + output_dim)) ** 0.5
    klstm = 1.0 / (hidden_dim ** 0.5)
    klat = 1.0 / (latent_dim ** 0.5)
    params = {
        # Linear(latent_dim, hidden_dim): stored pre-transposed -> y = x @ W + b
        "w_l2h": jax.random.uniform(ks[0], (latent_dim, hidden_dim), jnp.float32, -bl2h, bl2h),
        "b_l2h": jax.random.uniform(ks[1], (1, hidden_dim), jnp.float32, -klat, klat),
        # LSTM recurrent weights, gate order (i|f|g|o) concatenated on the lane
        # axis, stored pre-transposed so gates = h @ w_hh + b_gates -> (B, 4H)
        "w_hh": jax.random.uniform(ks[2], (hidden_dim, 4 * hidden_dim), jnp.float32, -klstm, klstm),
        # combined bias b_ih + b_hh (W_ih multiplies a zero input -> omitted exactly)
        "b_gates": (
            jax.random.uniform(ks[3], (1, 4 * hidden_dim), jnp.float32, -klstm, klstm)
            + jax.random.uniform(ks[4], (1, 4 * hidden_dim), jnp.float32, -klstm, klstm)
        ),
        # Linear(hidden_dim, output_dim)
        "w_ho": jax.random.uniform(ks[5], (hidden_dim, output_dim), jnp.float32, -bho, bho),
        "b_ho": jax.random.uniform(ks[6], (1, output_dim), jnp.float32, -klstm, klstm),
    }
    return params


def decoder_reference(x, params, seq_length):
    """Pure-JAX reference for correctness checking."""
    H = params["w_l2h"].shape[1]
    h = x @ params["w_l2h"] + params["b_l2h"]
    c = jnp.zeros_like(h)

    def step(carry, _):
        h, c = carry
        gates = h @ params["w_hh"] + params["b_gates"]
        i_g = jax.nn.sigmoid(gates[:, 0 * H:1 * H])
        f_g = jax.nn.sigmoid(gates[:, 1 * H:2 * H])
        g_g = jnp.tanh(gates[:, 2 * H:3 * H])
        o_g = jax.nn.sigmoid(gates[:, 3 * H:4 * H])
        c_new = f_g * c + i_g * g_g
        h_new = o_g * jnp.tanh(c_new)
        y = h_new @ params["w_ho"] + params["b_ho"]
        return (h_new, c_new), y

    _, ys = jax.lax.scan(step, (h, c), None, length=seq_length)
    return ys


if __name__ == "__main__":
    seq_length = 8
    latent_dim = 16
    hidden_dim = 32
    output_dim = 16
    batch_size = 4

    key = jax.random.PRNGKey(0)
    kx, kp = jax.random.split(key)
    x = jax.random.normal(kx, (batch_size, latent_dim), dtype=jnp.float32)
    params = init_params(kp, seq_length, latent_dim, hidden_dim, output_dim)

    out = decoder_forward(x, params, seq_length)
    out = jax.block_until_ready(out)

    ref = jax.block_until_ready(decoder_reference(x, params, seq_length))
    assert out.shape == (seq_length, batch_size, output_dim), out.shape
    assert jnp.allclose(out, ref, atol=1e-5, rtol=1e-5), "mismatch vs pure-JAX reference"

    print("KERNEL_OK")
</pallas_src>

<mosaic_0001>
module attributes {stable_mosaic.version = 11 : i64} {
  func.func @decoder_kernel(%arg0: memref<4x16xf32, #tpu.memory_space<vmem>>, %arg1: memref<16x32xf32, #tpu.memory_space<vmem>>, %arg2: memref<1x32xf32, #tpu.memory_space<vmem>>, %arg3: memref<32x128xf32, #tpu.memory_space<vmem>>, %arg4: memref<1x128xf32, #tpu.memory_space<vmem>>, %arg5: memref<32x16xf32, #tpu.memory_space<vmem>>, %arg6: memref<1x16xf32, #tpu.memory_space<vmem>>, %arg7: memref<32x16xf32, #tpu.memory_space<vmem>>) attributes {dimension_semantics = [], scalar_prefetch = 0 : i64, scratch_operands = 0 : i64, tpu.core_type = #tpu.core_type<tc>} {
    %c0 = arith.constant 0 : index
    %c0_0 = arith.constant 0 : index
    %0 = vector.load %arg0[%c0, %c0_0] : memref<4x16xf32, #tpu.memory_space<vmem>>, vector<4x16xf32>
    %c0_1 = arith.constant 0 : index
    %c0_2 = arith.constant 0 : index
    %1 = vector.load %arg1[%c0_1, %c0_2] : memref<16x32xf32, #tpu.memory_space<vmem>>, vector<16x32xf32>
    %cst = arith.constant dense<0.000000e+00> : vector<4x32xf32>
    %2 = tpu.matmul %0, %1, %cst {dimension_numbers = #tpu.dot_dimension_numbers<[1], [0], [0], [1], [0, 0, 1, 1], [], []>} : vector<4x16xf32>, vector<16x32xf32>, vector<4x32xf32> -> vector<4x32xf32>
    %c0_3 = arith.constant 0 : index
    %c0_4 = arith.constant 0 : index
    %3 = vector.load %arg2[%c0_3, %c0_4] : memref<1x32xf32, #tpu.memory_space<vmem>>, vector<1x32xf32>
    %4 = vector.broadcast %3 : vector<1x32xf32> to vector<4x32xf32>
    %5 = arith.addf %2, %4 : vector<4x32xf32>
    %cst_5 = arith.constant 0.000000e+00 : f32
    %6 = vector.broadcast %cst_5 : f32 to vector<4x32xf32>
    %c0_6 = arith.constant 0 : index
    %c0_7 = arith.constant 0 : index
    %7 = vector.load %arg3[%c0_6, %c0_7] : memref<32x128xf32, #tpu.memory_space<vmem>>, vector<32x128xf32>
    %c0_8 = arith.constant 0 : index
    %c0_9 = arith.constant 0 : index
    %8 = vector.load %arg4[%c0_8, %c0_9] : memref<1x128xf32, #tpu.memory_space<vmem>>, vector<1x128xf32>
    %9 = vector.shape_cast %8 : vector<1x128xf32> to vector<1x128xf32>
    %10 = vector.broadcast %9 : vector<1x128xf32> to vector<4x128xf32>
    %cst_10 = arith.constant dense<0.000000e+00> : vector<4x128xf32>
    %11 = tpu.matmul %5, %7, %cst_10 {dimension_numbers = #tpu.dot_dimension_numbers<[1], [0], [0], [1], [0, 0, 1, 1], [], []>} : vector<4x32xf32>, vector<32x128xf32>, vector<4x128xf32> -> vector<4x128xf32>
    %12 = arith.addf %11, %10 : vector<4x128xf32>
    %13 = arith.negf %12 : vector<4x128xf32>
    %14 = math.exp %13 : vector<4x128xf32>
    %cst_11 = arith.constant 1.000000e+00 : f32
    %15 = vector.broadcast %cst_11 : f32 to vector<4x128xf32>
    %16 = arith.addf %15, %14 : vector<4x128xf32>
    %17 = arith.divf %15, %16 : vector<4x128xf32>
    %18 = math.tanh %12 : vector<4x128xf32>
    %19 = vector.extract_strided_slice %17 {offsets = [0, 0], sizes = [4, 32], strides = [1, 1]} : vector<4x128xf32> to vector<4x32xf32>
    %20 = vector.extract_strided_slice %17 {offsets = [0, 32], sizes = [4, 32], strides = [1, 1]} : vector<4x128xf32> to vector<4x32xf32>
    %21 = vector.extract_strided_slice %18 {offsets = [0, 64], sizes = [4, 32], strides = [1, 1]} : vector<4x128xf32> to vector<4x32xf32>
    %22 = vector.extract_strided_slice %17 {offsets = [0, 96], sizes = [4, 32], strides = [1, 1]} : vector<4x128xf32> to vector<4x32xf32>
    %23 = arith.mulf %20, %6 : vector<4x32xf32>
    %24 = arith.mulf %19, %21 : vector<4x32xf32>
    %25 = arith.addf %23, %24 : vector<4x32xf32>
    %26 = math.tanh %25 : vector<4x32xf32>
    %27 = arith.mulf %22, %26 : vector<4x32xf32>
    %cst_12 = arith.constant dense<0.000000e+00> : vector<4x128xf32>
    %28 = tpu.matmul %27, %7, %cst_12 {dimension_numbers = #tpu.dot_dimension_numbers<[1], [0], [0], [1], [0, 0, 1, 1], [], []>} : vector<4x32xf32>, vector<32x128xf32>, vector<4x128xf32> -> vector<4x128xf32>
    %29 = arith.addf %28, %10 : vector<4x128xf32>
    %30 = arith.negf %29 : vector<4x128xf32>
    %31 = math.exp %30 : vector<4x128xf32>
    %cst_13 = arith.constant 1.000000e+00 : f32
    %32 = vector.broadcast %cst_13 : f32 to vector<4x128xf32>
    %33 = arith.addf %32, %31 : vector<4x128xf32>
    %34 = arith.divf %32, %33 : vector<4x128xf32>
    %35 = math.tanh %29 : vector<4x128xf32>
    %36 = vector.extract_strided_slice %34 {offsets = [0, 0], sizes = [4, 32], strides = [1, 1]} : vector<4x128xf32> to vector<4x32xf32>
    %37 = vector.extract_strided_slice %34 {offsets = [0, 32], sizes = [4, 32], strides = [1, 1]} : vector<4x128xf32> to vector<4x32xf32>
    %38 = vector.extract_strided_slice %35 {offsets = [0, 64], sizes = [4, 32], strides = [1, 1]} : vector<4x128xf32> to vector<4x32xf32>
    %39 = vector.extract_strided_slice %34 {offsets = [0, 96], sizes = [4, 32], strides = [1, 1]} : vector<4x128xf32> to vector<4x32xf32>
    %40 = arith.mulf %37, %25 : vector<4x32xf32>
    %41 = arith.mulf %36, %38 : vector<4x32xf32>
    %42 = arith.addf %40, %41 : vector<4x32xf32>
    %43 = math.tanh %42 : vector<4x32xf32>
    %44 = arith.mulf %39, %43 : vector<4x32xf32>
    %cst_14 = arith.constant dense<0.000000e+00> : vector<4x128xf32>
    %45 = tpu.matmul %44, %7, %cst_14 {dimension_numbers = #tpu.dot_dimension_numbers<[1], [0], [0], [1], [0, 0, 1, 1], [], []>} : vector<4x32xf32>, vector<32x128xf32>, vector<4x128xf32> -> vector<4x128xf32>
    %46 = arith.addf %45, %10 : vector<4x128xf32>
    %47 = arith.negf %46 : vector<4x128xf32>
    %48 = math.exp %47 : vector<4x128xf32>
    %cst_15 = arith.constant 1.000000e+00 : f32
    %49 = vector.broadcast %cst_15 : f32 to vector<4x128xf32>
    %50 = arith.addf %49, %48 : vector<4x128xf32>
    %51 = arith.divf %49, %50 : vector<4x128xf32>
    %52 = math.tanh %46 : vector<4x128xf32>
    %53 = vector.extract_strided_slice %51 {offsets = [0, 0], sizes = [4, 32], strides = [1, 1]} : vector<4x128xf32> to vector<4x32xf32>
    %54 = vector.extract_strided_slice %51 {offsets = [0, 32], sizes = [4, 32], strides = [1, 1]} : vector<4x128xf32> to vector<4x32xf32>
    %55 = vector.extract_strided_slice %52 {offsets = [0, 64], sizes = [4, 32], strides = [1, 1]} : vector<4x128xf32> to vector<4x32xf32>
    %56 = vector.extract_strided_slice %51 {offsets = [0, 96], sizes = [4, 32], strides = [1, 1]} : vector<4x128xf32> to vector<4x32xf32>
    %57 = arith.mulf %54, %42 : vector<4x32xf32>
    %58 = arith.mulf %53, %55 : vector<4x32xf32>
    %59 = arith.addf %57, %58 : vector<4x32xf32>
    %60 = math.tanh %59 : vector<4x32xf32>
    %61 = arith.mulf %56, %60 : vector<4x32xf32>
    %cst_16 = arith.constant dense<0.000000e+00> : vector<4x128xf32>
    %62 = tpu.matmul %61, %7, %cst_16 {dimension_numbers = #tpu.dot_dimension_numbers<[1], [0], [0], [1], [0, 0, 1, 1], [], []>} : vector<4x32xf32>, vector<32x128xf32>, vector<4x128xf32> -> vector<4x128xf32>
    %63 = arith.addf %62, %10 : vector<4x128xf32>
    %64 = arith.negf %63 : vector<4x128xf32>
    %65 = math.exp %64 : vector<4x128xf32>
    %cst_17 = arith.constant 1.000000e+00 : f32
    %66 = vector.broadcast %cst_17 : f32 to vector<4x128xf32>
    %67 = arith.addf %66, %65 : vector<4x128xf32>
    %68 = arith.divf %66, %67 : vector<4x128xf32>
    %69 = math.tanh %63 : vector<4x128xf32>
    %70 = vector.extract_strided_slice %68 {offsets = [0, 0], sizes = [4, 32], strides = [1, 1]} : vector<4x128xf32> to vector<4x32xf32>
    %71 = vector.extract_strided_slice %68 {offsets = [0, 32], sizes = [4, 32], strides = [1, 1]} : vector<4x128xf32> to vector<4x32xf32>
    %72 = vector.extract_strided_slice %69 {offsets = [0, 64], sizes = [4, 32], strides = [1, 1]} : vector<4x128xf32> to vector<4x32xf32>
    %73 = vector.extract_strided_slice %68 {offsets = [0, 96], sizes = [4, 32], strides = [1, 1]} : vector<4x128xf32> to vector<4x32xf32>
    %74 = arith.mulf %71, %59 : vector<4x32xf32>
    %75 = arith.mulf %70, %72 : vector<4x32xf32>
    %76 = arith.addf %74, %75 : vector<4x32xf32>
    %77 = math.tanh %76 : vector<4x32xf32>
    %78 = arith.mulf %73, %77 : vector<4x32xf32>
    %cst_18 = arith.constant dense<0.000000e+00> : vector<4x128xf32>
    %79 = tpu.matmul %78, %7, %cst_18 {dimension_numbers = #tpu.dot_dimension_numbers<[1], [0], [0], [1], [0, 0, 1, 1], [], []>} : vector<4x32xf32>, vector<32x128xf32>, vector<4x128xf32> -> vector<4x128xf32>
    %80 = arith.addf %79, %10 : vector<4x128xf32>
    %81 = arith.negf %80 : vector<4x128xf32>
    %82 = math.exp %81 : vector<4x128xf32>
    %cst_19 = arith.constant 1.000000e+00 : f32
    %83 = vector.broadcast %cst_19 : f32 to vector<4x128xf32>
    %84 = arith.addf %83, %82 : vector<4x128xf32>
    %85 = arith.divf %83, %84 : vector<4x128xf32>
    %86 = math.tanh %80 : vector<4x128xf32>
    %87 = vector.extract_strided_slice %85 {offsets = [0, 0], sizes = [4, 32], strides = [1, 1]} : vector<4x128xf32> to vector<4x32xf32>
    %88 = vector.extract_strided_slice %85 {offsets = [0, 32], sizes = [4, 32], strides = [1, 1]} : vector<4x128xf32> to vector<4x32xf32>
    %89 = vector.extract_strided_slice %86 {offsets = [0, 64], sizes = [4, 32], strides = [1, 1]} : vector<4x128xf32> to vector<4x32xf32>
    %90 = vector.extract_strided_slice %85 {offsets = [0, 96], sizes = [4, 32], strides = [1, 1]} : vector<4x128xf32> to vector<4x32xf32>
    %91 = arith.mulf %88, %76 : vector<4x32xf32>
    %92 = arith.mulf %87, %89 : vector<4x32xf32>
    %93 = arith.addf %91, %92 : vector<4x32xf32>
    %94 = math.tanh %93 : vector<4x32xf32>
    %95 = arith.mulf %90, %94 : vector<4x32xf32>
    %cst_20 = arith.constant dense<0.000000e+00> : vector<4x128xf32>
    %96 = tpu.matmul %95, %7, %cst_20 {dimension_numbers = #tpu.dot_dimension_numbers<[1], [0], [0], [1], [0, 0, 1, 1], [], []>} : vector<4x32xf32>, vector<32x128xf32>, vector<4x128xf32> -> vector<4x128xf32>
    %97 = arith.addf %96, %10 : vector<4x128xf32>
    %98 = arith.negf %97 : vector<4x128xf32>
    %99 = math.exp %98 : vector<4x128xf32>
    %cst_21 = arith.constant 1.000000e+00 : f32
    %100 = vector.broadcast %cst_21 : f32 to vector<4x128xf32>
    %101 = arith.addf %100, %99 : vector<4x128xf32>
    %102 = arith.divf %100, %101 : vector<4x128xf32>
    %103 = math.tanh %97 : vector<4x128xf32>
    %104 = vector.extract_strided_slice %102 {offsets = [0, 0], sizes = [4, 32], strides = [1, 1]} : vector<4x128xf32> to vector<4x32xf32>
    %105 = vector.extract_strided_slice %102 {offsets = [0, 32], sizes = [4, 32], strides = [1, 1]} : vector<4x128xf32> to vector<4x32xf32>
    %106 = vector.extract_strided_slice %103 {offsets = [0, 64], sizes = [4, 32], strides = [1, 1]} : vector<4x128xf32> to vector<4x32xf32>
    %107 = vector.extract_strided_slice %102 {offsets = [0, 96], sizes = [4, 32], strides = [1, 1]} : vector<4x128xf32> to vector<4x32xf32>
    %108 = arith.mulf %105, %93 : vector<4x32xf32>
    %109 = arith.mulf %104, %106 : vector<4x32xf32>
    %110 = arith.addf %108, %109 : vector<4x32xf32>
    %111 = math.tanh %110 : vector<4x32xf32>
    %112 = arith.mulf %107, %111 : vector<4x32xf32>
    %cst_22 = arith.constant dense<0.000000e+00> : vector<4x128xf32>
    %113 = tpu.matmul %112, %7, %cst_22 {dimension_numbers = #tpu.dot_dimension_numbers<[1], [0], [0], [1], [0, 0, 1, 1], [], []>} : vector<4x32xf32>, vector<32x128xf32>, vector<4x128xf32> -> vector<4x128xf32>
    %114 = arith.addf %113, %10 : vector<4x128xf32>
    %115 = arith.negf %114 : vector<4x128xf32>
    %116 = math.exp %115 : vector<4x128xf32>
    %cst_23 = arith.constant 1.000000e+00 : f32
    %117 = vector.broadcast %cst_23 : f32 to vector<4x128xf32>
    %118 = arith.addf %117, %116 : vector<4x128xf32>
    %119 = arith.divf %117, %118 : vector<4x128xf32>
    %120 = math.tanh %114 : vector<4x128xf32>
    %121 = vector.extract_strided_slice %119 {offsets = [0, 0], sizes = [4, 32], strides = [1, 1]} : vector<4x128xf32> to vector<4x32xf32>
    %122 = vector.extract_strided_slice %119 {offsets = [0, 32], sizes = [4, 32], strides = [1, 1]} : vector<4x128xf32> to vector<4x32xf32>
    %123 = vector.extract_strided_slice %120 {offsets = [0, 64], sizes = [4, 32], strides = [1, 1]} : vector<4x128xf32> to vector<4x32xf32>
    %124 = vector.extract_strided_slice %119 {offsets = [0, 96], sizes = [4, 32], strides = [1, 1]} : vector<4x128xf32> to vector<4x32xf32>
    %125 = arith.mulf %122, %110 : vector<4x32xf32>
    %126 = arith.mulf %121, %123 : vector<4x32xf32>
    %127 = arith.addf %125, %126 : vector<4x32xf32>
    %128 = math.tanh %127 : vector<4x32xf32>
    %129 = arith.mulf %124, %128 : vector<4x32xf32>
    %cst_24 = arith.constant dense<0.000000e+00> : vector<4x128xf32>
    %130 = tpu.matmul %129, %7, %cst_24 {dimension_numbers = #tpu.dot_dimension_numbers<[1], [0], [0], [1], [0, 0, 1, 1], [], []>} : vector<4x32xf32>, vector<32x128xf32>, vector<4x128xf32> -> vector<4x128xf32>
    %131 = arith.addf %130, %10 : vector<4x128xf32>
    %132 = arith.negf %131 : vector<4x128xf32>
    %133 = math.exp %132 : vector<4x128xf32>
    %cst_25 = arith.constant 1.000000e+00 : f32
    %134 = vector.broadcast %cst_25 : f32 to vector<4x128xf32>
    %135 = arith.addf %134, %133 : vector<4x128xf32>
    %136 = arith.divf %134, %135 : vector<4x128xf32>
    %137 = math.tanh %131 : vector<4x128xf32>
    %138 = vector.extract_strided_slice %136 {offsets = [0, 0], sizes = [4, 32], strides = [1, 1]} : vector<4x128xf32> to vector<4x32xf32>
    %139 = vector.extract_strided_slice %136 {offsets = [0, 32], sizes = [4, 32], strides = [1, 1]} : vector<4x128xf32> to vector<4x32xf32>
    %140 = vector.extract_strided_slice %137 {offsets = [0, 64], sizes = [4, 32], strides = [1, 1]} : vector<4x128xf32> to vector<4x32xf32>
    %141 = vector.extract_strided_slice %136 {offsets = [0, 96], sizes = [4, 32], strides = [1, 1]} : vector<4x128xf32> to vector<4x32xf32>
    %142 = arith.mulf %139, %127 : vector<4x32xf32>
    %143 = arith.mulf %138, %140 : vector<4x32xf32>
    %144 = arith.addf %142, %143 : vector<4x32xf32>
    %145 = math.tanh %144 : vector<4x32xf32>
    %146 = arith.mulf %141, %145 : vector<4x32xf32>
    %147 = tpu.concatenate %27, %44, %61, %78, %95, %112, %129, %146 in 0 : vector<4x32xf32>, vector<4x32xf32>, vector<4x32xf32>, vector<4x32xf32>, vector<4x32xf32>, vector<4x32xf32>, vector<4x32xf32>, vector<4x32xf32> -> vector<32x32xf32>
    %c0_26 = arith.constant 0 : index
    %c0_27 = arith.constant 0 : index
    %148 = vector.load %arg5[%c0_26, %c0_27] : memref<32x16xf32, #tpu.memory_space<vmem>>, vector<32x16xf32>
    %cst_28 = arith.constant dense<0.000000e+00> : vector<32x16xf32>
    %149 = tpu.matmul %147, %148, %cst_28 {dimension_numbers = #tpu.dot_dimension_numbers<[1], [0], [0], [1], [0, 0, 1, 1], [], []>} : vector<32x32xf32>, vector<32x16xf32>, vector<32x16xf32> -> vector<32x16xf32>
    %c0_29 = arith.constant 0 : index
    %c0_30 = arith.constant 0 : index
    %150 = vector.load %arg6[%c0_29, %c0_30] : memref<1x16xf32, #tpu.memory_space<vmem>>, vector<1x16xf32>
    %151 = vector.broadcast %150 : vector<1x16xf32> to vector<32x16xf32>
    %152 = arith.addf %149, %151 : vector<32x16xf32>
    %c0_31 = arith.constant 0 : index
    %c0_32 = arith.constant 0 : index
    %153 = vector.load %arg7[%c0_31, %c0_32] : memref<32x16xf32, #tpu.memory_space<vmem>>, vector<32x16xf32>
    tpu.vector_store %arg7[%c0_31, %c0_32], %152 {strides = array<i32>} : memref<32x16xf32, #tpu.memory_space<vmem>>, vector<32x16xf32>,
    return
  }
}

</mosaic_0001>

<bundles_post_ra>
// kernel: tpu_custom_call.1
= control target key start
LH: loop header
LB: loop body
LE: loop exit
PB: predicated region body
PF: predicated region fallthrough
CT: control target
= control target key end

     0   :  { %12 = vsyncpa [#allocation3], 0  ;;  %s1400_s24 = smov [#allocation2]   ;;  %s1650_s0 = inlined_call_operand.hbm [shape: f32[4,16], index: 0, kind: input, shape index: {}]   ;;  %s1651_s1 = inlined_call_operand.vmem [shape: f32[16,32], index: 1, kind: input, shape index: {}]   ;;  %s1652_s2 = inlined_call_operand.vmem [shape: f32[1,32], index: 2, kind: input, shape index: {}]   ;;  %s1653_s3 = inlined_call_operand.vmem [shape: f32[32,128], index: 3, kind: input, shape index: {}]   ;;  %s1654_s4 = inlined_call_operand.vmem [shape: f32[1,128], index: 4, kind: input, shape index: {}]   ;;  %s1655_s5 = inlined_call_operand.vmem [shape: f32[32,16], index: 5, kind: input, shape index: {}]   ;;  %s1656_s6 = inlined_call_operand.vmem [shape: f32[1,16], index: 6, kind: input, shape index: {}]   ;;  %s1657_s7 = inlined_call_operand.vmem [shape: f32[32,16], index: 7, kind: output, shape index: {}]  }
   0x1   :  { %s19_s25 = sshll.u32 %s1400_s24, 4  ;;  %s1376_s28 = scalar_lea.hbm %s1650_s0, 64  ;;  %s20_s25 = int_to_ptr.vmem [resolvable:$true] %s19_s25 }
   0x2   :  { %p1377_p0 = scmp.ne.s32.totalorder %s1650_s0, %s1376_s28  ;;  %p1380_p1 = scmp.lt.u32.totalorder %s1376_s28, %s1650_s0 }
   0x4   :  { %p1382_p2 = pnand %p1380_p1, %p1377_p0 }
   0x6   :  { %1385 = shalt.err (!%p1382_p2)
}
   0x7   :  { %s1386_s10 = scalar_lea.vmem %s20_s25, 64  ;;  %p1391_p4 = scmp.lt.s32.totalorder %s20_s25, %s20_s25 }
   0x8   :  { %p1387_p3 = scmp.ne.s32.totalorder %s20_s25, %s1386_s10  ;;  %p1392_p5 = scmp.lt.s32.totalorder %s1386_s10, %s1386_s10 }
   0xa   :  { %p1393_p6 = por %p1392_p5, %p1391_p4 }
   0xc   :  { %p1394_p7 = pnand %p1393_p6, %p1387_p3 }
   0xe   :  { %1397 = shalt.err (!%p1394_p7)
}
   0xf   :  { %22 = dma.hbm_to_vmem [thread:$0]  %s1650_s0, 64, %s20_s25, [#allocation3]  }
  0x10   :  { %1398 = dma.done.wait [#allocation3], 64  }
  0x11   :  { %1399 = vsyncadd [#allocation3], 4294967232  ;;  %v1401_v0 = vmov 0.0|0.0   ;;  %vm1402_vm0 = vmmov 0   ;;  %v1403_v1 = vmov 0.0   ;;  %v39_v2 = vld [vmem:[%s1651_s1] sm:$0xff] }
  0x12   :  { %1247 = vmatprep.subr.bf16.mxu0 %v1401_v0  ;;  %1142 = vmatprep.mubr.msk.f32.mxu0 %vm1402_vm0, %v1403_v1  ;;  %v40_v3 = vld [vmem:[%s1651_s1 + $0x8] sm:$0xff]  ;;  %v122_v5 = vld [vmem:[%s1653_s3] sm:$0xff]  ;;  %vm48_vm1 = vcmask 130048   ;;  %v124_v9 = vld [vmem:[%s1653_s3 + $0x10] sm:$0xff]  ;;  %vm133_vm2 = vcmask 261120   ;;  %s1405_s26 = smov 32  }
  0x13   :  { %1250 = vmatprep.subr.bf16.mxu1 %v1401_v0  ;;  %1153 = vmatprep.mubr.msk.f32.mxu1 %vm1402_vm0, %v1403_v1  ;;  %v1248_v4 = vpack.c.bf16 %v40_v3, %v39_v2  ;;  %v123_v6 = vld [vmem:[%s1653_s3 + $0x8] sm:$0xff]  ;;  %v38_v8 = vld [vmem:[#allocation2] sm:$0xf]  ;;  %v125_v10 = vld [vmem:[%s1653_s3 + $0x18] sm:$0xff]  ;;  %vm933_vm3 = vcmask 1043456  }
  0x14   :  { %v1476_v7 = vpack.c.bf16 %v123_v6, %v122_v5  ;;  %v1492_v11 = vpack.c.bf16 %v125_v10, %v124_v9  ;;  %v1063_v12 = vld [vmem:[%s1652_s2] ss:$0 sm:$0xff]  ;;  %s1404_s2 = smov 64  }
  0x15   :  { %1249 = vmatpush3.bf16.msra.mxu0 %v1248_v4  ;;  %v1511_v16 = vld [vmem:[%s1654_s4] ss:$0 sm:$0xff] }
  0x16   :  { %1252 = vmatpush3.bf16.msra.mxu1 %v1476_v7  ;;  %1256 = vmatprep.subr.bf16.mxu0 %v1401_v0 }
  0x17   :  { %1253 = vmatprep.subr.bf16.mxu1 %v1401_v0 }
  0x18   :  { %1143 = vmatmul.mubr.msk.f32.vlgmr.msra.gmra.mrb[0].mxu0 %vm48_vm1, %v38_v8 }
  0x19   :  { %1258 = vmatpush3.bf16.msra.mxu0 %v1476_v7  ;;  %1164 = vmatprep.mubr.msk.f32.mxu0 %vm1402_vm0, %v1403_v1 }
  0x1a   :  { %1259 = vmatprep.subr.bf16.mxu0 %v1401_v0  ;;  %1255 = vmatpush3.bf16.msra.mxu1 %v1492_v11 }
  0x1b   :  { %1262 = vmatprep.subr.bf16.mxu1 %v1401_v0 }
  0x1d   :  { %1261 = vmatpush3.bf16.msra.mxu0 %v1492_v11 }
  0x1e   :  { %1268 = vmatprep.subr.bf16.mxu0 %v1401_v0 }
  0xeb   :  { %v118_v13 = vpop.f32.mrb[0].mxu0 }
  0xec   :  { %v119_v14 = vadd.f32 %v1063_v12, %v118_v13  ;;  %v1144_v15 = vpop.f32.mrb[1].mxu0 }
  0xee   :  { %1154 = vmatmul.mubr.msk.f32.vlgmr.msra.gmra.mrb[0].mxu1 %vm133_vm2, %v119_v14 }
  0xef   :  { %1264 = vmatpush3.bf16.msra.mxu1 %v1476_v7  ;;  %1175 = vmatprep.mubr.msk.f32.mxu1 %vm1402_vm0, %v1403_v1 }
  0xf0   :  { %1265 = vmatprep.subr.bf16.mxu1 %v1401_v0 }
  0xf3   :  { %1267 = vmatpush3.bf16.msra.mxu1 %v1492_v11 }
  0xf4   :  { %1274 = vmatprep.subr.bf16.mxu1 %v1401_v0 }
 0x1c1   :  { %v203_v17 = vpop.f32.mrb[0].mxu1 }
 0x1c2   :  { %v204_v18 = vadd.f32 %v1511_v16, %v203_v17  ;;  %v1155_v19 = vpop.f32.mrb[1].mxu1 }
 0x1c4   :  { %1312 = vtanh.f32 %v204_v18  ;;  %v1067_v21 = vmul.f32 -1.442695, %v204_v18 }
 0x1c6   :  { %1314 = vpow2.f32 %v1067_v21 }
 0x1ce   :  { %v1313_v20 = vpop.eup %1312 }
 0x1cf   :  { %216 = vrot.lane.b32.xlu0 %v1313_v20, %s1404_s2 }
 0x1d0   :  { %v1315_v22 = vpop.eup %1314 }
 0x1d1   :  { %v210_v23 = vadd.f32 1.0, %v1315_v22 }
 0x1d3   :  { %1316 = vrcp.f32 %v210_v23 }
 0x1dd   :  { %v1317_v24 = vpop.eup %1316 }
 0x1de   :  { %v214_v27 = vmul.f32 0.0, %v1317_v24 }
 0x241   :  { %v217_v25 = vpop.permute.xlu0 %216 }
 0x242   :  { %v219_v26 = vmul.f32 %v1317_v24, %v217_v25 }
 0x244   :  { %221 = vrot.lane.b32.xlu0 %v219_v26, %s1405_s26 }
 0x2b6   :  { %v222_v28 = vpop.permute.xlu0 %221 }
 0x2b7   :  { %v224_v29 = vadd.f32 %v222_v28, %v214_v27 }
 0x2b9   :  { %1318 = vtanh.f32 %v224_v29 }
 0x2c3   :  { %v1319_v30 = vpop.eup %1318 }
 0x2c4   :  { %227 = vrot.lane.b32.xlu1 %v1319_v30, %s1404_s2 }
 0x336   :  { %v228_v31 = vpop.permute.xlu1 %227 }
 0x337   :  { %v1517_v32 = vmul.f32 %v1317_v24, %v228_v31 }
 0x339   :  { %232 = vrot.lane.b32.xlu1 %v1517_v32, %s1405_s26 }
 0x3ab   :  { %v233_v33 = vpop.permute.xlu1 %232 }
 0x3ac   :  { %1165 = vmatmul.mubr.msk.f32.vlgmr.msra.gmra.mrb[2].mxu0 %vm133_vm2, %v233_v33 }
 0x3ad   :  { %1270 = vmatpush3.bf16.msra.mxu0 %v1476_v7  ;;  %1186 = vmatprep.mubr.msk.f32.mxu0 %vm1402_vm0, %v1403_v1 }
 0x3ae   :  { %1271 = vmatprep.subr.bf16.mxu0 %v1401_v0 }
 0x3b1   :  { %1273 = vmatpush3.bf16.msra.mxu0 %v1492_v11 }
 0x3b2   :  { %1280 = vmatprep.subr.bf16.mxu0 %v1401_v0 }
 0x47f   :  { %v302_v34 = vpop.f32.mrb[2].mxu0 }
 0x480   :  { %v303_v35 = vadd.f32 %v1511_v16, %v302_v34  ;;  %v1166_v36 = vpop.f32.mrb[3].mxu0 }
 0x482   :  { %1320 = vtanh.f32 %v303_v35  ;;  %v1069_v38 = vmul.f32 -1.442695, %v303_v35 }
 0x484   :  { %1322 = vpow2.f32 %v1069_v38 }
 0x48c   :  { %v1321_v37 = vpop.eup %1320 }
 0x48d   :  { %315 = vrot.lane.b32.xlu0 %v1321_v37, %s1404_s2 }
 0x48e   :  { %v1323_v39 = vpop.eup %1322 }
 0x48f   :  { %v309_v40 = vadd.f32 1.0, %v1323_v39 }
 0x491   :  { %1324 = vrcp.f32 %v309_v40 }
 0x49b   :  { %v1325_v41 = vpop.eup %1324 }
 0x49c   :  { %v313_v44 = vmul.f32 %v1325_v41, %v224_v29 }
 0x4ff   :  { %v316_v42 = vpop.permute.xlu0 %315 }
 0x500   :  { %v318_v43 = vmul.f32 %v1325_v41, %v316_v42 }
 0x502   :  { %320 = vrot.lane.b32.xlu1 %v318_v43, %s1405_s26 }
 0x574   :  { %v321_v45 = vpop.permute.xlu1 %320 }
 0x575   :  { %v323_v46 = vadd.f32 %v321_v45, %v313_v44 }
 0x577   :  { %1326 = vtanh.f32 %v323_v46 }
 0x581   :  { %v1327_v47 = vpop.eup %1326 }
 0x582   :  { %326 = vrot.lane.b32.xlu0 %v1327_v47, %s1404_s2 }
 0x5f4   :  { %v327_v48 = vpop.permute.xlu0 %326 }
 0x5f5   :  { %v1532_v49 = vmul.f32 %v1325_v41, %v327_v48 }
 0x5f7   :  { %331 = vrot.lane.b32.xlu1 %v1532_v49, %s1405_s26 }
 0x669   :  { %v332_v50 = vpop.permute.xlu1 %331 }
 0x66a   :  { %1176 = vmatmul.mubr.msk.f32.vlgmr.msra.gmra.mrb[2].mxu1 %vm133_vm2, %v332_v50 }
 0x66b   :  { %1276 = vmatpush3.bf16.msra.mxu1 %v1476_v7  ;;  %1197 = vmatprep.mubr.msk.f32.mxu1 %vm1402_vm0, %v1403_v1 }
 0x66c   :  { %1277 = vmatprep.subr.bf16.mxu1 %v1401_v0 }
 0x66f   :  { %1279 = vmatpush3.bf16.msra.mxu1 %v1492_v11 }
 0x670   :  { %1286 = vmatprep.subr.bf16.mxu1 %v1401_v0 }
 0x73d   :  { %v401_v51 = vpop.f32.mrb[2].mxu1 }
 0x73e   :  { %v402_v52 = vadd.f32 %v1511_v16, %v401_v51  ;;  %v1177_v53 = vpop.f32.mrb[3].mxu1 }
 0x740   :  { %1328 = vtanh.f32 %v402_v52  ;;  %v1071_v55 = vmul.f32 -1.442695, %v402_v52 }
 0x742   :  { %1330 = vpow2.f32 %v1071_v55 }
 0x74a   :  { %v1329_v54 = vpop.eup %1328 }
 0x74b   :  { %414 = vrot.lane.b32.xlu0 %v1329_v54, %s1404_s2 }
 0x74c   :  { %v1331_v56 = vpop.eup %1330 }
 0x74d   :  { %v408_v57 = vadd.f32 1.0, %v1331_v56 }
 0x74f   :  { %1332 = vrcp.f32 %v408_v57 }
 0x759   :  { %v1333_v58 = vpop.eup %1332 }
 0x75a   :  { %v412_v61 = vmul.f32 %v1333_v58, %v323_v46 }
 0x7bd   :  { %v415_v59 = vpop.permute.xlu0 %414 }
 0x7be   :  { %v417_v60 = vmul.f32 %v1333_v58, %v415_v59 }
 0x7c0   :  { %419 = vrot.lane.b32.xlu1 %v417_v60, %s1405_s26 }
 0x832   :  { %v420_v62 = vpop.permute.xlu1 %419 }
 0x833   :  { %v422_v63 = vadd.f32 %v420_v62, %v412_v61 }
 0x835   :  { %1334 = vtanh.f32 %v422_v63 }
 0x83f   :  { %v1335_v2 = vpop.eup %1334 }
 0x840   :  { %425 = vrot.lane.b32.xlu0 %v1335_v2, %s1404_s2 }
 0x8b2   :  { %v426_v3 = vpop.permute.xlu0 %425 }
 0x8b3   :  { %v1547_v4 = vmul.f32 %v1333_v58, %v426_v3 }
 0x8b5   :  { %430 = vrot.lane.b32.xlu1 %v1547_v4, %s1405_s26 }
 0x927   :  { %v431_v5 = vpop.permute.xlu1 %430 }
 0x928   :  { %1187 = vmatmul.mubr.msk.f32.vlgmr.msra.gmra.mrb[4].mxu0 %vm133_vm2, %v431_v5 }
 0x929   :  { %1282 = vmatpush3.bf16.msra.mxu0 %v1476_v7  ;;  %1208 = vmatprep.mubr.msk.f32.mxu0 %vm1402_vm0, %v1403_v1 }
 0x92a   :  { %1283 = vmatprep.subr.bf16.mxu0 %v1401_v0 }
 0x92d   :  { %1285 = vmatpush3.bf16.msra.mxu0 %v1492_v11 }
 0x92e   :  { %1292 = vmatprep.subr.bf16.mxu0 %v1401_v0 }
 0x9fb   :  { %v500_v6 = vpop.f32.mrb[4].mxu0 }
 0x9fc   :  { %v501_v8 = vadd.f32 %v1511_v16, %v500_v6  ;;  %v1188_v9 = vpop.f32.mrb[5].mxu0 }
 0x9fe   :  { %1336 = vtanh.f32 %v501_v8  ;;  %v1073_v12 = vmul.f32 -1.442695, %v501_v8 }
 0xa00   :  { %1338 = vpow2.f32 %v1073_v12 }
 0xa08   :  { %v1337_v10 = vpop.eup %1336 }
 0xa09   :  { %513 = vrot.lane.b32.xlu0 %v1337_v10, %s1404_s2 }
 0xa0a   :  { %v1339_v13 = vpop.eup %1338 }
 0xa0b   :  { %v507_v14 = vadd.f32 1.0, %v1339_v13 }
 0xa0d   :  { %1340 = vrcp.f32 %v507_v14 }
 0xa17   :  { %v1341_v15 = vpop.eup %1340 }
 0xa18   :  { %v511_v19 = vmul.f32 %v1341_v15, %v422_v63 }
 0xa7b   :  { %v514_v17 = vpop.permute.xlu0 %513 }
 0xa7c   :  { %v516_v18 = vmul.f32 %v1341_v15, %v514_v17 }
 0xa7e   :  { %518 = vrot.lane.b32.xlu1 %v516_v18, %s1405_s26 }
 0xaf0   :  { %v519_v20 = vpop.permute.xlu1 %518 }
 0xaf1   :  { %v521_v21 = vadd.f32 %v519_v20, %v511_v19 }
 0xaf3   :  { %1342 = vtanh.f32 %v521_v21 }
 0xafd   :  { %v1343_v22 = vpop.eup %1342 }
 0xafe   :  { %524 = vrot.lane.b32.xlu0 %v1343_v22, %s1404_s2 }
 0xb70   :  { %v525_v23 = vpop.permute.xlu0 %524 }
 0xb71   :  { %v1562_v24 = vmul.f32 %v1341_v15, %v525_v23 }
 0xb73   :  { %529 = vrot.lane.b32.xlu1 %v1562_v24, %s1405_s26 }
 0xbe5   :  { %v530_v25 = vpop.permute.xlu1 %529 }
 0xbe6   :  { %1198 = vmatmul.mubr.msk.f32.vlgmr.msra.gmra.mrb[4].mxu1 %vm133_vm2, %v530_v25 }
 0xbe7   :  { %1288 = vmatpush3.bf16.msra.mxu1 %v1476_v7  ;;  %1219 = vmatprep.mubr.msk.f32.mxu1 %vm1402_vm0, %v1403_v1 }
 0xbe8   :  { %1289 = vmatprep.subr.bf16.mxu1 %v1401_v0 }
 0xbeb   :  { %1291 = vmatpush3.bf16.msra.mxu1 %v1492_v11 }
 0xcb9   :  { %v599_v26 = vpop.f32.mrb[4].mxu1 }
 0xcba   :  { %v600_v27 = vadd.f32 %v1511_v16, %v599_v26  ;;  %v1199_v28 = vpop.f32.mrb[5].mxu1 }
 0xcbb   :  { %v924_v28 = vrot.slane %v1532_v49, 4 }
 0xcbc   :  { %1344 = vtanh.f32 %v600_v27  ;;  %v1075_v30 = vmul.f32 -1.442695, %v600_v27 }
 0xcbe   :  { %1346 = vpow2.f32 %v1075_v30  ;;  %v938_v30 = vld [vmem:[%s1655_s5] sm:$0xff] }
 0xcc6   :  { %v1345_v29 = vpop.eup %1344 }
 0xcc7   :  { %612 = vrot.lane.b32.xlu0 %v1345_v29, %s1404_s2 }
 0xcc8   :  { %v1347_v31 = vpop.eup %1346 }
 0xcc9   :  { %v606_v33 = vadd.f32 1.0, %v1347_v31  ;;  %v939_v31 = vld [vmem:[%s1655_s5 + $0x8] sm:$0xff] }
 0xccb   :  { %1348 = vrcp.f32 %v606_v33  ;;  %v1298_v33 = vpack.c.bf16 %v939_v31, %v938_v30 }
 0xccd   :  { %1299 = vmatprep.subr.bf16.mxu1 %v1298_v33 }
 0xcd5   :  { %v1349_v34 = vpop.eup %1348 }
 0xcd6   :  { %v610_v37 = vmul.f32 %v1349_v34, %v521_v21 }
 0xd39   :  { %v613_v35 = vpop.permute.xlu0 %612 }
 0xd3a   :  { %v615_v36 = vmul.f32 %v1349_v34, %v613_v35 }
 0xd3c   :  { %617 = vrot.lane.b32.xlu1 %v615_v36, %s1405_s26 }
 0xdae   :  { %v618_v38 = vpop.permute.xlu1 %617 }
 0xdaf   :  { %v620_v39 = vadd.f32 %v618_v38, %v610_v37 }
 0xdb1   :  { %1350 = vtanh.f32 %v620_v39 }
 0xdbb   :  { %v1351_v40 = vpop.eup %1350 }
 0xdbc   :  { %623 = vrot.lane.b32.xlu0 %v1351_v40, %s1404_s2 }
 0xe2e   :  { %v624_v41 = vpop.permute.xlu0 %623 }
 0xe2f   :  { %v1576_v42 = vmul.f32 %v1349_v34, %v624_v41  ;;  %v941_v34 = vld [vmem:[%s1655_s5 + $0x18] sm:$0xff]  ;;  %v926_v41 = vrot.slane %v1562_v24, 4 }
 0xe31   :  { %628 = vrot.lane.b32.xlu1 %v1576_v42, %s1405_s26 }
 0xea3   :  { %v629_v43 = vpop.permute.xlu1 %628 }
 0xea4   :  { %1209 = vmatmul.mubr.msk.f32.vlgmr.msra.gmra.mrb[6].mxu0 %vm133_vm2, %v629_v43 }
 0xea5   :  { %1294 = vmatpush3.bf16.msra.mxu0 %v1476_v7  ;;  %1230 = vmatprep.mubr.msk.f32.mxu0 %vm1402_vm0, %v1403_v1 }
 0xea6   :  { %1295 = vmatprep.subr.bf16.mxu0 %v1401_v0 }
 0xea9   :  { %1297 = vmatpush3.bf16.msra.mxu0 %v1492_v11 }
 0xf77   :  { %v698_v44 = vpop.f32.mrb[6].mxu0 }
 0xf78   :  { %v699_v45 = vadd.f32 %v1511_v16, %v698_v44  ;;  %v1210_v46 = vpop.f32.mrb[7].mxu0 }
 0xf7a   :  { %1352 = vtanh.f32 %v699_v45  ;;  %v1077_v48 = vmul.f32 -1.442695, %v699_v45 }
 0xf7c   :  { %1354 = vpow2.f32 %v1077_v48 }
 0xf84   :  { %v1353_v47 = vpop.eup %1352 }
 0xf85   :  { %711 = vrot.lane.b32.xlu0 %v1353_v47, %s1404_s2 }
 0xf86   :  { %v1355_v50 = vpop.eup %1354 }
 0xf87   :  { %v705_v51 = vadd.f32 1.0, %v1355_v50 }
 0xf89   :  { %1356 = vrcp.f32 %v705_v51 }
 0xf93   :  { %v1357_v7 = vpop.eup %1356 }
 0xf94   :  { %v709_v0 = vmul.f32 %v1357_v7, %v620_v39 }
 0xff7   :  { %v712_v52 = vpop.permute.xlu0 %711 }
 0xff8   :  { %v714_v1 = vmul.f32 %v1357_v7, %v712_v52 }
 0xffa   :  { %716 = vrot.lane.b32.xlu1 %v714_v1, %s1405_s26 }
0x106c   :  { %v717_v11 = vpop.permute.xlu1 %716 }
0x106d   :  { %v719_v53 = vadd.f32 %v717_v11, %v709_v0 }
0x106f   :  { %1358 = vtanh.f32 %v719_v53 }
0x1079   :  { %v1359_v54 = vpop.eup %1358 }
0x107a   :  { %722 = vrot.lane.b32.xlu0 %v1359_v54, %s1404_s2 }
0x10ec   :  { %v723_v55 = vpop.permute.xlu0 %722 }
0x10ed   :  { %v725_v56 = vmul.f32 %v1357_v7, %v723_v55 }
0x10ef   :  { %727 = vrot.lane.b32.xlu1 %v725_v56, %s1405_s26  ;;  %v928_v29 = vrot.slane %v725_v56, 4 }
0x10f1   :  { %v936_v49 = vsel %vm933_vm3, %v1576_v42, %v928_v29  ;;  %v935_v42 = vsel %vm933_vm3, %v1547_v4, %v926_v41  ;;  %v1082_v4 = vld [vmem:[%s1656_s6] ss:$0 sm:$0xff] }
0x1161   :  { %v728_v57 = vpop.permute.xlu1 %727 }
0x1162   :  { %1220 = vmatmul.mubr.msk.f32.vlgmr.msra.gmra.mrb[6].mxu1 %vm133_vm2, %v728_v57 }
0x1163   :  { %1301 = vmatpush3.bf16.msra.mxu1 %v1298_v33 }
0x1235   :  { %v797_v58 = vpop.f32.mrb[6].mxu1 }
0x1236   :  { %v798_v59 = vadd.f32 %v1511_v16, %v797_v58  ;;  %v1221_v60 = vpop.f32.mrb[7].mxu1 }
0x1238   :  { %1360 = vtanh.f32 %v798_v59  ;;  %v1079_v62 = vmul.f32 -1.442695, %v798_v59 }
0x123a   :  { %1362 = vpow2.f32 %v1079_v62 }
0x1242   :  { %v1361_v61 = vpop.eup %1360 }
0x1243   :  { %810 = vrot.lane.b32.xlu0 %v1361_v61, %s1404_s2 }
0x1244   :  { %v1363_v63 = vpop.eup %1362 }
0x1245   :  { %v804_v2 = vadd.f32 1.0, %v1363_v63 }
0x1247   :  { %1364 = vrcp.f32 %v804_v2 }
0x1251   :  { %v1365_v3 = vpop.eup %1364 }
0x1252   :  { %v808_v8 = vmul.f32 %v1365_v3, %v719_v53 }
0x12b5   :  { %v811_v5 = vpop.permute.xlu0 %810 }
0x12b6   :  { %v813_v6 = vmul.f32 %v1365_v3, %v811_v5 }
0x12b8   :  { %815 = vrot.lane.b32.xlu1 %v813_v6, %s1405_s26 }
0x132a   :  { %v816_v9 = vpop.permute.xlu1 %815 }
0x132b   :  { %v818_v10 = vadd.f32 %v816_v9, %v808_v8 }
0x132d   :  { %1366 = vtanh.f32 %v818_v10 }
0x1337   :  { %v1367_v12 = vpop.eup %1366 }
0x1338   :  { %821 = vrot.lane.b32.xlu0 %v1367_v12, %s1404_s2 }
0x13aa   :  { %v822_v13 = vpop.permute.xlu0 %821 }
0x13ab   :  { %v824_v14 = vmul.f32 %v1365_v3, %v822_v13 }
0x13ad   :  { %826 = vrot.lane.b32.xlu1 %v824_v14, %s1405_s26 }
0x141f   :  { %v827_v15 = vpop.permute.xlu1 %826 }
0x1420   :  { %1231 = vmatmul.mubr.msk.f32.vlgmr.msra.gmra.mrb[8].mxu0 %vm133_vm2, %v827_v15 }
0x14f3   :  { %v896_v17 = vpop.f32.mrb[8].mxu0 }
0x14f4   :  { %v897_v18 = vadd.f32 %v1511_v16, %v896_v17  ;;  %v1232_v19 = vpop.f32.mrb[9].mxu0  ;;  %v934_v16 = vsel %vm933_vm3, %v1517_v32, %v924_v28  ;;  %v940_v32 = vld [vmem:[%s1655_s5 + $0x10] sm:$0xff] }
0x14f5   :  { %v1302_v36 = vpack.c.bf16 %v941_v34, %v940_v32 }
0x14f6   :  { %1368 = vtanh.f32 %v897_v18  ;;  %v1081_v21 = vmul.f32 -1.442695, %v897_v18 }
0x14f7   :  { %1303 = vmatprep.subr.bf16.mxu1 %v1302_v36 }
0x14f8   :  { %1370 = vpow2.f32 %v1081_v21  ;;  %1305 = vmatpush3.bf16.msra.mxu1 %v1302_v36 }
0x1500   :  { %v1369_v20 = vpop.eup %1368 }
0x1501   :  { %909 = vrot.lane.b32.xlu0 %v1369_v20, %s1404_s2 }
0x1502   :  { %v1371_v22 = vpop.eup %1370 }
0x1503   :  { %v903_v23 = vadd.f32 1.0, %v1371_v22 }
0x1505   :  { %1372 = vrcp.f32 %v903_v23 }
0x150f   :  { %v1373_v25 = vpop.eup %1372 }
0x1510   :  { %v907_v35 = vmul.f32 %v1373_v25, %v818_v10 }
0x1573   :  { %v910_v26 = vpop.permute.xlu0 %909 }
0x1574   :  { %v912_v27 = vmul.f32 %v1373_v25, %v910_v26 }
0x1576   :  { %914 = vrot.lane.b32.xlu1 %v912_v27, %s1405_s26 }
0x157a   :  { %953 = vrot.lane.b32.xlu1 %v934_v16, %s1405_s26 }
0x157e   :  { %957 = vrot.lane.b32.xlu1 %v936_v49, %s1405_s26 }
0x15e8   :  { %v915_v37 = vpop.permute.xlu1 %914 }
0x15e9   :  { %v917_v38 = vadd.f32 %v915_v37, %v907_v35 }
0x15eb   :  { %1374 = vtanh.f32 %v917_v38 }
0x15ec   :  { %v954_v39 = vpop.permute.xlu1 %953 }
0x15ed   :  { %1241 = vmatprep.mubr.msk.f32.mxu1 %vm133_vm2, %v954_v39 }
0x15f0   :  { %v958_v47 = vpop.permute.xlu1 %957 }
0x15f5   :  { %v1375_v40 = vpop.eup %1374 }
0x15f6   :  { %920 = vrot.lane.b32.xlu0 %v1375_v40, %s1404_s2 }
0x15fa   :  { %955 = vrot.lane.b32.xlu0 %v935_v42, %s1405_s26 }
0x1668   :  { %v921_v43 = vpop.permute.xlu0 %920 }
0x1669   :  { %v923_v44 = vmul.f32 %v1373_v25, %v921_v43 }
0x166b   :  { %v931_v45 = vrot.slane %v923_v44, 4 }
0x166c   :  { %v956_v46 = vpop.permute.xlu0 %955 }
0x166d   :  { %1242 = vmatmul.mubr.msk.f32.vlgmr.msra.gmra.mrb[8].mxu1 %vm133_vm2, %v956_v46  ;;  %v937_v48 = vsel %vm933_vm3, %v824_v14, %v931_v45 }
0x166e   :  { %959 = vrot.lane.b32.xlu0 %v937_v48, %s1405_s26  ;;  %1244 = vmatprep.mubr.msk.f32.mxu1 %vm133_vm2, %v958_v47 }
0x16e0   :  { %v960_v24 = vpop.permute.xlu0 %959 }
0x16e1   :  { %1245 = vmatmul.mubr.msk.f32.gmra.mrb[10].mxu1 %vm133_vm2, %v960_v24 }
0x1740   :  { %v1243_v50 = vpop.f32.mrb[8].mxu1 }
0x1741   :  { %v1041_v51 = vadd.f32 %v1243_v50, %v1082_v4  ;;  %v1035_v7 = vpop.f32.mrb[9].mxu1 }
0x1742   :  { %v1036_v52 = vadd.f32 %v1082_v4, %v1035_v7 }
0x1743   :  { %1055 = vst.msk [vmem:[%s1657_s7 + $0x8] sm:$0xff] %vm48_vm1, %v1041_v51 }
0x1744   :  { %1054 = vst.msk [vmem:[%s1657_s7] sm:$0xff] %vm48_vm1, %v1036_v52 }
0x17b4   :  { %v1246_v1 = vpop.f32.mrb[10].mxu1 }
0x17b5   :  { %v1051_v0 = vadd.f32 %v1246_v1, %v1082_v4  ;;  %v1045_v11 = vpop.f32.mrb[11].mxu1 }
0x17b6   :  { %v1046_v53 = vadd.f32 %v1082_v4, %v1045_v11 }
0x17b7   :  { %1057 = vst.msk [vmem:[%s1657_s7 + $0x18] sm:$0xff] %vm48_vm1, %v1051_v0 }
0x17b8   :  { %1056 = vst.msk [vmem:[%s1657_s7 + $0x10] sm:$0xff] %vm48_vm1, %v1046_v53 }
0x17b9   :  { %1062 = vsyncpa [#allocation3], 1 }

</bundles_post_ra>
